<compile_context>
chip_gen: v5e
topology: v5e:2x2
jax: 0.10.0
libtpu: 0.0.40
codegen_flags: <defaults>
</compile_context>

<pallas_src>
import jax
import jax.numpy as jnp
from jax.experimental import pallas as pl
from jax.experimental.pallas import tpu as pltpu


def _packed_linear_kernel(x_ref, w_ref, b_ref, o_ref):
    # x: (tp, 128) f32 packed rows, w: (128, 160) f32 block-diag of 32 x W^T,
    # b: (1, 160) f32 tiled bias, o: (tp, 160) f32 packed outputs.
    acc = jnp.dot(x_ref[...], w_ref[...], preferred_element_type=jnp.float32)
    o_ref[...] = (acc + b_ref[...]).astype(o_ref.dtype)


def _round_up(n, m):
    return ((n + m - 1) // m) * m


def linear(x, weight, bias, *,
           single_call_bytes=4 << 20,   # gridless path if packed x+y fits here
           tile_rows_max=4096,          # ~2 MiB x / 2.5 MiB y per step
           min_grid_steps=8):           # keep v7x's 2 TCs pipelined
    """y = x @ weight.T + bias  (PyTorch nn.Linear forward).

    x: (B, IN) f32, weight: (OUT, IN) f32 (PyTorch layout), bias: (OUT,) f32.
    """
    B, in_features = x.shape
    out_features = weight.shape[0]
    dtype = x.dtype

    # Pack `pack` logical rows per lane-dense row.
    pack = max(1, 128 // in_features)       # 32 for IN=4
    p_in = pack * in_features               # 128
    p_out = pack * out_features             # 160

    # Block-diagonal weight + tiled bias: packed_x @ w_block == per-row x @ W^T.
    w_block = jnp.kron(jnp.eye(pack, dtype=dtype), weight.T.astype(dtype))  # (128, 160)
    b_packed = jnp.tile(bias.astype(dtype), pack).reshape(1, p_out)         # (1, 160)

    # Pad batch to a multiple of `pack` (<= pack-1 rows), then reshape for free.
    B_pad = _round_up(B, pack)
    if B_pad != B:
        x = jnp.pad(x, ((0, B_pad - B), (0, 0)))
    P = B_pad // pack
    xp = x.reshape(P, p_in)

    bytes_io = P * (p_in + p_out) * x.dtype.itemsize

    if bytes_io <= single_call_bytes:
        # Overhead-bound regime: one gridless call, whole arrays resident in VMEM.
        # TODO(synk): for the truly tiny demo shape (B=8, ~320 FLOPs) the real win
        # is fusing this Linear into the producer/consumer kernel, not this call.
        vmem = pl.BlockSpec(memory_space=pltpu.MemorySpace.VMEM)
        yp = pl.pallas_call(
            _packed_linear_kernel,
            out_shape=jax.ShapeDtypeStruct((P, p_out), dtype),
            in_specs=[vmem, vmem, vmem],
            out_specs=vmem,
        )(xp, w_block, b_packed)
    else:
        # Batch-tiled path: double-buffered lane-dense tiles, batch axis parallel.
        tp = min(tile_rows_max, _round_up(pl.cdiv(P, min_grid_steps), 8))
        tp = max(tp, 8)
        grid = (pl.cdiv(P, tp),)     # ragged last tile handled by Pallas masking
        yp = pl.pallas_call(
            _packed_linear_kernel,
            out_shape=jax.ShapeDtypeStruct((P, p_out), dtype),
            grid=grid,
            in_specs=[
                pl.BlockSpec((tp, p_in), lambda i: (i, 0)),
                pl.BlockSpec((p_in, p_out), lambda i: (0, 0)),   # replicated W
                pl.BlockSpec((1, p_out), lambda i: (0, 0)),      # replicated bias
            ],
            out_specs=pl.BlockSpec((tp, p_out), lambda i: (i, 0)),
            compiler_params=pltpu.CompilerParams(
                dimension_semantics=("parallel",),
            ),
        )(xp, w_block, b_packed)

    y = yp.reshape(B_pad, out_features)
    return y[:B] if B_pad != B else y


if __name__ == "__main__":
    key = jax.random.PRNGKey(0)
    kw, kb, kx1, kx2, kx3 = jax.random.split(key, 5)

    IN, OUT = 4, 5
    # Deterministic params (mimics nn.Linear's uniform(-1/sqrt(IN), 1/sqrt(IN)))
    bound = 1.0 / (IN ** 0.5)
    weight = jax.random.uniform(kw, (OUT, IN), jnp.float32, -bound, bound)
    bias = jax.random.uniform(kb, (OUT,), jnp.float32, -bound, bound)

    def ref(xv):
        return xv @ weight.T + bias

    # 1) Demo-sized tiny batch: gridless lane-dense packed call.
    x1 = jax.random.normal(kx1, (8, IN), jnp.float32)
    y1 = jax.block_until_ready(linear(x1, weight, bias))
    assert y1.shape == (8, OUT)
    assert jnp.allclose(y1, ref(x1), atol=1e-4, rtol=1e-4)

    # 2) Batch not a multiple of the pack factor: exercises wrapper-side padding.
    x2 = jax.random.normal(kx2, (1000, IN), jnp.float32)
    y2 = jax.block_until_ready(linear(x2, weight, bias))
    assert y2.shape == (1000, OUT)
    assert jnp.allclose(y2, ref(x2), atol=1e-4, rtol=1e-4)

    # 3) Force the batch-tiled grid path (ragged last tile + "parallel" batch axis).
    x3 = jax.random.normal(kx3, (100_003, IN), jnp.float32)
    y3 = jax.block_until_ready(linear(x3, weight, bias, single_call_bytes=0))
    assert y3.shape == (100_003, OUT)
    assert jnp.allclose(y3, ref(x3), atol=1e-4, rtol=1e-4)

    print("KERNEL_OK")
</pallas_src>

<mosaic_0001>
module attributes {stable_mosaic.version = 11 : i64} {
  func.func @_packed_linear_kernel(%arg0: memref<1x128xf32, #tpu.memory_space<vmem>>, %arg1: memref<128x160xf32, #tpu.memory_space<vmem>>, %arg2: memref<1x160xf32, #tpu.memory_space<vmem>>, %arg3: memref<1x160xf32, #tpu.memory_space<vmem>>) attributes {dimension_semantics = [], scalar_prefetch = 0 : i64, scratch_operands = 0 : i64, tpu.core_type = #tpu.core_type<tc>} {
    %c0 = arith.constant 0 : index
    %c0_0 = arith.constant 0 : index
    %0 = vector.load %arg0[%c0, %c0_0] : memref<1x128xf32, #tpu.memory_space<vmem>>, vector<1x128xf32>
    %c0_1 = arith.constant 0 : index
    %c0_2 = arith.constant 0 : index
    %1 = vector.load %arg1[%c0_1, %c0_2] : memref<128x160xf32, #tpu.memory_space<vmem>>, vector<128x160xf32>
    %cst = arith.constant dense<0.000000e+00> : vector<1x160xf32>
    %2 = tpu.matmul %0, %1, %cst {dimension_numbers = #tpu.dot_dimension_numbers<[1], [0], [0], [1], [0, 0, 1, 1], [], []>} : vector<1x128xf32>, vector<128x160xf32>, vector<1x160xf32> -> vector<1x160xf32>
    %c0_3 = arith.constant 0 : index
    %c0_4 = arith.constant 0 : index
    %3 = vector.load %arg2[%c0_3, %c0_4] : memref<1x160xf32, #tpu.memory_space<vmem>>, vector<1x160xf32>
    %4 = arith.addf %2, %3 : vector<1x160xf32>
    %c0_5 = arith.constant 0 : index
    %c0_6 = arith.constant 0 : index
    %5 = vector.load %arg3[%c0_5, %c0_6] : memref<1x160xf32, #tpu.memory_space<vmem>>, vector<1x160xf32>
    tpu.vector_store %arg3[%c0_5, %c0_6], %4 {strides = array<i32>} : memref<1x160xf32, #tpu.memory_space<vmem>>, vector<1x160xf32>,
    return
  }
}

</mosaic_0001>

<bundles_post_ra>
// kernel: tpu_custom_call.1
= control target key start
LH: loop header
LB: loop body
LE: loop exit
PB: predicated region body
PF: predicated region fallthrough
CT: control target
= control target key end

     0   :  { %s274_s0 = inlined_call_operand.vmem [shape: f32[1,128], index: 0, kind: input, shape index: {}]   ;;  %s275_s1 = inlined_call_operand.vmem [shape: f32[128,160], index: 1, kind: input, shape index: {}]   ;;  %s276_s2 = inlined_call_operand.vmem [shape: f32[1,160], index: 2, kind: input, shape index: {}]   ;;  %s277_s3 = inlined_call_operand.hbm [shape: f32[1,160], index: 3, kind: output, shape index: {}]  }
   0x1   :  { %v47_v0 = vld [vmem:[%s275_s1 + $0xf8] sm:$0xff]  ;;  %v46_v1 = vld [vmem:[%s275_s1 + $0xf0] sm:$0xff]  ;;  %v45_v2 = vld [vmem:[%s275_s1 + $0xe8] sm:$0xff] }
   0x2   :  { %74 = vmatpush.msra.mxu1 %v47_v0  ;;  %54 = vmatpush.msra.mxu0 %v46_v1  ;;  %v44_v3 = vld [vmem:[%s275_s1 + $0xe0] sm:$0xff]  ;;  %v43_v4 = vld [vmem:[%s275_s1 + $0xd8] sm:$0xff]  ;;  %v42_v5 = vld [vmem:[%s275_s1 + $0xd0] sm:$0xff] }
   0x3   :  { %v41_v6 = vld [vmem:[%s275_s1 + $0xc8] sm:$0xff]  ;;  %v40_v7 = vld [vmem:[%s275_s1 + $0xc0] sm:$0xff]  ;;  %v39_v8 = vld [vmem:[%s275_s1 + $0xb8] sm:$0xff] }
   0x4   :  { %75 = vmatpush.msra.mxu1 %v45_v2  ;;  %55 = vmatpush.msra.mxu0 %v44_v3  ;;  %v38_v9 = vld [vmem:[%s275_s1 + $0xb0] sm:$0xff]  ;;  %v37_v10 = vld [vmem:[%s275_s1 + $0xa8] sm:$0xff]  ;;  %v36_v11 = vld [vmem:[%s275_s1 + $0xa0] sm:$0xff] }
   0x5   :  { %v35_v12 = vld [vmem:[%s275_s1 + $0x98] sm:$0xff]  ;;  %v34_v13 = vld [vmem:[%s275_s1 + $0x90] sm:$0xff] }
   0x6   :  { %76 = vmatpush.msra.mxu1 %v43_v4  ;;  %56 = vmatpush.msra.mxu0 %v42_v5 }
   0x8   :  { %77 = vmatpush.msra.mxu1 %v41_v6  ;;  %57 = vmatpush.msra.mxu0 %v40_v7 }
   0xa   :  { %78 = vmatpush.msra.mxu1 %v39_v8  ;;  %58 = vmatpush.msra.mxu0 %v38_v9 }
   0xc   :  { %79 = vmatpush.msra.mxu1 %v37_v10  ;;  %59 = vmatpush.msra.mxu0 %v36_v11 }
   0xd   :  { %8 = vsyncpa [#allocation3], 0  ;;  %v33_v14 = vld [vmem:[%s275_s1 + $0x88] sm:$0xff]  ;;  %v32_v15 = vld [vmem:[%s275_s1 + $0x80] sm:$0xff]  ;;  %v100_v36 = vlaneseq  ;;  %vm97_vm0 = vcmask 1040384  }
   0xe   :  { %80 = vmatpush.msra.mxu1 %v35_v12  ;;  %60 = vmatpush.msra.mxu0 %v34_v13  ;;  %v31_v16 = vld [vmem:[%s275_s1 + $0x78] sm:$0xff]  ;;  %v30_v17 = vld [vmem:[%s275_s1 + $0x70] sm:$0xff]  ;;  %v29_v18 = vld [vmem:[%s275_s1 + $0x68] sm:$0xff] }
   0xf   :  { %v28_v19 = vld [vmem:[%s275_s1 + $0x60] sm:$0xff]  ;;  %v27_v20 = vld [vmem:[%s275_s1 + $0x58] sm:$0xff]  ;;  %v26_v21 = vld [vmem:[%s275_s1 + $0x50] sm:$0xff]  ;;  %vm102_vm1 = vcmp.lt.s32.totalorder %v100_v36, 160 }
  0x10   :  { %81 = vmatpush.msra.mxu1 %v33_v14  ;;  %61 = vmatpush.msra.mxu0 %v32_v15  ;;  %v25_v22 = vld [vmem:[%s275_s1 + $0x48] sm:$0xff]  ;;  %v24_v23 = vld [vmem:[%s275_s1 + $0x40] sm:$0xff]  ;;  %v23_v24 = vld [vmem:[%s275_s1 + $0x38] sm:$0xff] }
  0x11   :  { %v22_v25 = vld [vmem:[%s275_s1 + $0x30] sm:$0xff]  ;;  %v21_v26 = vld [vmem:[%s275_s1 + $0x28] sm:$0xff]  ;;  %v20_v27 = vld [vmem:[%s275_s1 + $0x20] sm:$0xff] }
  0x12   :  { %82 = vmatpush.msra.mxu1 %v31_v16  ;;  %62 = vmatpush.msra.mxu0 %v30_v17  ;;  %v19_v28 = vld [vmem:[%s275_s1 + $0x18] sm:$0xff]  ;;  %v18_v29 = vld [vmem:[%s275_s1 + $0x10] sm:$0xff]  ;;  %v17_v30 = vld [vmem:[%s275_s1 + $0x8] sm:$0xff] }
  0x13   :  { %v16_v31 = vld [vmem:[%s275_s1] sm:$0xff]  ;;  %s148_s1 = smov [#allocation2]  }
  0x14   :  { %83 = vmatpush.msra.mxu1 %v29_v18  ;;  %63 = vmatpush.msra.mxu0 %v28_v19  ;;  %v15_v32 = vld [vmem:[%s274_s0] sm:$0x1]  ;;  %s110_s26 = sshll.u32 %s148_s1, 4  ;;  %s112_s0 = sshll.u32 %s277_s3, 4  ;;  %s111_s26 = int_to_ptr.vmem [resolvable:$true] %s110_s26  ;;  %s113_s0 = int_to_ptr.hbm [resolvable:$true] %s112_s0 }
  0x15   :  { %v48_v33 = vld [vmem:[%s276_s2] sm:$0x3] }
  0x16   :  { %84 = vmatpush.msra.mxu1 %v27_v20  ;;  %64 = vmatpush.msra.mxu0 %v26_v21  ;;  %v51_v34 = vperm.slane %v48_v33, 1  ;;  %v50_v35 = vperm.slane %v48_v33, 0 }
  0x18   :  { %85 = vmatpush.msra.mxu1 %v25_v22  ;;  %65 = vmatpush.msra.mxu0 %v24_v23 }
  0x1a   :  { %86 = vmatpush.msra.mxu1 %v23_v24  ;;  %66 = vmatpush.msra.mxu0 %v22_v25 }
  0x1c   :  { %87 = vmatpush.msra.mxu1 %v21_v26  ;;  %67 = vmatpush.msra.mxu0 %v20_v27 }
  0x1e   :  { %88 = vmatpush.msra.mxu1 %v19_v28  ;;  %68 = vmatpush.msra.mxu0 %v18_v29 }
  0x20   :  { %89 = vmatpush.msra.mxu1 %v17_v30  ;;  %69 = vmatpush.msra.mxu0 %v16_v31 }
  0x21   :  { %90 = vmatmul.f32.vlgmr.msra.gmra.mxu1 %v15_v32  ;;  %70 = vmatmul.f32.vlgmr.msra.gmra.mxu0 %v15_v32 }
  0x9e   :  { %v91_v37 = vpop.f32.mrf.mxu1  ;;  %v71_v38 = vpop.f32.mrf.mxu0 }
  0x9f   :  { %v92_v39 = vadd.f32 %v91_v37, %v51_v34  ;;  %v72_v40 = vadd.f32 %v71_v38, %v50_v35 }
  0xa1   :  { %v96_v41 = vrot.slane %v92_v39, 7 }
  0xa3   :  { %v98_v42 = vsel %vm97_vm0, %v72_v40, %v96_v41 }
  0xa4   :  { %104 = vst.msk [vmem:[#allocation2] sm:$0x3] %vm102_vm1, %v98_v42 }
  0xa5   :  { %115 = dma.vmem_to_hbm [thread:$0]  %s111_s26, 32, %s113_s0, [#allocation3]  }
  0xa6   :  { %146 = dma.done.wait [#allocation3], 32  }
  0xa7   :  { %147 = vsyncadd [#allocation3], 4294967264 }
  0xa8   :  { %120 = vsyncpa [#allocation3], 1 }

</bundles_post_ra>
